<compile_context>
chip_gen: v6e
topology: v6e:2x2x1
jax: 0.10.0
libtpu: 0.0.40
codegen_flags: <defaults>
</compile_context>

<pallas_src>
import functools

import jax
import jax.numpy as jnp
from jax import lax
from jax.experimental import pallas as pl
from jax.experimental.pallas import tpu as pltpu


def _round_up(x, m):
    return (x + m - 1) // m * m


# ----------------------------------------------------------------------------
# Kernel 1: weights-resident path (1-D grid over row tiles).
# ----------------------------------------------------------------------------
def _ffn_resident_kernel(x_ref, g_ref, bt_ref, w1_ref, b1_ref, w2_ref, b2_ref,
                         o_ref, *, eps):
    # x_ref : (tm, d_model)        input rows (original dtype)
    # g_ref : (1, d_model)         LayerNorm gamma (f32)
    # bt_ref: (1, d_model)         LayerNorm beta  (f32)
    # w1_ref: (F_pad, d_model)     W1 (native layout, compute dtype, resident)
    # b1_ref: (1, F_pad)           b1 (f32)
    # w2_ref: (d_model, F_pad)     W2 (native layout, compute dtype, resident)
    # b2_ref: (1, d_model)         b2 (f32)
    xf = x_ref[...].astype(jnp.float32)
    mu = jnp.mean(xf, axis=-1, keepdims=True)
    var = jnp.mean(jnp.square(xf - mu), axis=-1, keepdims=True)
    xn = ((xf - mu) * lax.rsqrt(var + eps)) * g_ref[...] + bt_ref[...]
    xn = xn.astype(w1_ref.dtype)

    # h = LayerNorm(x) @ W1^T  (contract on d_model; MXU transpose_rhs form)
    h = lax.dot_general(xn, w1_ref[...], (((1,), (1,)), ((), ())),
                        preferred_element_type=jnp.float32)
    h = jnp.maximum(h + b1_ref[...], 0.0)
    # y = h @ W2^T  (contract on d_ff)
    y = lax.dot_general(h.astype(w2_ref.dtype), w2_ref[...],
                        (((1,), (1,)), ((), ())),
                        preferred_element_type=jnp.float32)
    o_ref[...] = (xf + y + b2_ref[...]).astype(o_ref.dtype)


# ----------------------------------------------------------------------------
# Kernel 2: streaming fallback (grid = row tiles x d_ff tiles).
# ----------------------------------------------------------------------------
def _ffn_streaming_kernel(x_ref, g_ref, bt_ref, w1_ref, b1_ref, w2_ref, b2_ref,
                          o_ref, xn_ref, *acc, eps):
    # w1_ref: (tf, d_model) native-layout slice; w2_ref: (d_model, tf) slice.
    # xn_ref: (tm, d_model) cached LayerNorm(x) (compute dtype).
    # acc   : optional (tm, d_model) f32 scratch; if absent, accumulate
    #         directly into the resident f32 output block.
    acc_ref = acc[0] if acc else o_ref
    k = pl.program_id(1)

    @pl.when(k == 0)
    def _init():
        xf = x_ref[...].astype(jnp.float32)
        mu = jnp.mean(xf, axis=-1, keepdims=True)
        var = jnp.mean(jnp.square(xf - mu), axis=-1, keepdims=True)
        xn = ((xf - mu) * lax.rsqrt(var + eps)) * g_ref[...] + bt_ref[...]
        xn_ref[...] = xn.astype(xn_ref.dtype)
        # Fold b2 into the accumulator init (no extra epilogue add).
        acc_ref[...] = jnp.broadcast_to(b2_ref[...],
                                        acc_ref.shape).astype(acc_ref.dtype)

    h = lax.dot_general(xn_ref[...], w1_ref[...], (((1,), (1,)), ((), ())),
                        preferred_element_type=jnp.float32)
    h = jnp.maximum(h + b1_ref[...], 0.0)
    y = lax.dot_general(h.astype(w2_ref.dtype), w2_ref[...],
                        (((1,), (1,)), ((), ())),
                        preferred_element_type=jnp.float32)
    acc_ref[...] += y.astype(acc_ref.dtype)

    @pl.when(k == pl.num_programs(1) - 1)
    def _finalize():
        o_ref[...] = (x_ref[...].astype(jnp.float32)
                      + acc_ref[...].astype(jnp.float32)).astype(o_ref.dtype)


# ----------------------------------------------------------------------------
# Wrapper.
# ----------------------------------------------------------------------------
def decoder_ffn_sublayer(x, gamma, beta, w1, b1, w2, b2, *,
                         eps=1e-5, compute_dtype=jnp.bfloat16,
                         weights_resident=None):
    """x: (batch, seq, d_model). PyTorch conventions:
    w1: (d_ff, d_model), b1: (d_ff,), w2: (d_model, d_ff), b2: (d_model,),
    gamma/beta: (d_model,). Returns x + FFN(LayerNorm(x)) (eval-mode dropout).
    compute_dtype: MXU operand dtype (default bf16; pass jnp.float32 to opt
    out). weights_resident: None=auto, True/False to force the path."""
    batch, seq, d_model = x.shape
    d_ff = w1.shape[0]
    M = batch * seq
    xdt = x.dtype
    cdtype = jnp.dtype(compute_dtype)
    csz = cdtype.itemsize
    xsz = jnp.dtype(xdt).itemsize
    lane_F = _round_up(d_ff, 128)
    sub = 16 if csz == 2 else 8    # avoid padded sublanes in bf16 LN cache

    # ---- per-generation VMEM budget (v5e/v6e: 128 MiB, v7x: 64 MiB) --------
    try:
        vmem_cap = int(pltpu.get_tpu_info().vmem_capacity_bytes)
    except Exception:
        vmem_cap = 64 * 1024 * 1024
    vmem_budget = min(vmem_cap * 3 // 4, 112 * 1024 * 1024)
    vmem_budget = max(vmem_budget, 32 * 1024 * 1024)

    # Native-layout weights, cast only if needed (no wrapper-side transpose).
    w1c = w1 if w1.dtype == cdtype else w1.astype(cdtype)   # (d_ff, d_model)
    w2c = w2 if w2.dtype == cdtype else w2.astype(cdtype)   # (d_model, d_ff)
    g2d = gamma.astype(jnp.float32).reshape(1, d_model)
    be2d = beta.astype(jnp.float32).reshape(1, d_model)
    b1r = b1.astype(jnp.float32).reshape(1, d_ff)
    b2r = b2.astype(jnp.float32).reshape(1, d_model)
    x2d = x.reshape(M, d_model)

    # ---- weights-resident fast path: VMEM need ------------------------------
    def resident_need(tm_):
        w_bytes = 2 * lane_F * d_model * csz            # W1 + W2
        return (2 * w_bytes                             # (double-buffered)
                + 4 * tm_ * d_model * xsz               # x in + out tiles (2x each)
                + tm_ * lane_F * (4 + csz)              # h f32 + cast copy
                + 2 * tm_ * d_model * 4                 # LN temporaries
                + (2 * lane_F + 4 * d_model) * 4)       # biases, gamma/beta

    tm_res = None
    for cand in (512, 256, 128, 64, 32, 16, 8):
        tm_try = _round_up(min(cand, _round_up(M, sub)), sub)
        if resident_need(tm_try) <= vmem_budget:
            tm_res = tm_try
            break

    if weights_resident is None:
        use_resident = tm_res is not None
    else:
        use_resident = bool(weights_resident) and tm_res is not None

    flops = int(4 * M * d_model * d_ff + 10 * M * d_model)

    # ========================================================================
    # Path A: weights resident in VMEM, 1-D grid over row tiles.
    # ========================================================================
    if use_resident:
        tm = tm_res
        M_pad = _round_up(M, tm)
        F_pad = lane_F
        if M_pad != M:
            x2d = jnp.pad(x2d, ((0, M_pad - M), (0, 0)))
        if F_pad != d_ff:
            w1c = jnp.pad(w1c, ((0, F_pad - d_ff), (0, 0)))
            w2c = jnp.pad(w2c, ((0, 0), (0, F_pad - d_ff)))
            b1r = jnp.pad(b1r, ((0, 0), (0, F_pad - d_ff)))

        cost = pl.CostEstimate(
            flops=flops,
            transcendentals=int(M),
            bytes_accessed=int(2 * M_pad * d_model * xsz
                               + 2 * d_model * F_pad * csz
                               + (2 * F_pad + 4 * d_model) * 4))

        out2d = pl.pallas_call(
            functools.partial(_ffn_resident_kernel, eps=eps),
            out_shape=jax.ShapeDtypeStruct((M_pad, d_model), xdt),
            grid_spec=pltpu.PrefetchScalarGridSpec(
                num_scalar_prefetch=0,
                grid=(M_pad // tm,),
                in_specs=[
                    pl.BlockSpec((tm, d_model), lambda i: (i, 0)),      # x
                    pl.BlockSpec((1, d_model), lambda i: (0, 0)),       # gamma
                    pl.BlockSpec((1, d_model), lambda i: (0, 0)),       # beta
                    pl.BlockSpec((F_pad, d_model), lambda i: (0, 0)),   # W1 (resident)
                    pl.BlockSpec((1, F_pad), lambda i: (0, 0)),         # b1
                    pl.BlockSpec((d_model, F_pad), lambda i: (0, 0)),   # W2 (resident)
                    pl.BlockSpec((1, d_model), lambda i: (0, 0)),       # b2
                ],
                out_specs=pl.BlockSpec((tm, d_model), lambda i: (i, 0)),
            ),
            compiler_params=pltpu.CompilerParams(
                dimension_semantics=("parallel",),
                vmem_limit_bytes=int(vmem_budget),
            ),
            cost_estimate=cost,
        )(x2d, g2d, be2d, w1c, b1r, w2c, b2r)
        return out2d[:M].reshape(batch, seq, d_model)

    # ========================================================================
    # Path B: streaming fallback (weights too large for VMEM).
    # ========================================================================
    acc_in_out = jnp.dtype(xdt) == jnp.float32   # accumulate in output block

    def streaming_need(tm_, tf_):
        return (2 * (tm_ * d_model * xsz          # x tiles
                     + tf_ * d_model * csz        # W1 slice
                     + d_model * tf_ * csz        # W2 slice
                     + tf_ * 4                    # b1 slice
                     + 3 * d_model * 4)           # b2, gamma, beta
                + 2 * tm_ * d_model * xsz         # out tiles
                + tm_ * d_model * csz             # xn scratch
                + (0 if acc_in_out else tm_ * d_model * 4)   # acc scratch
                + tm_ * tf_ * (4 + csz))          # h temporaries

    tm = tf = None
    for tm_c in (1024, 512, 256, 128, 64, 32, 16, 8):
        tm_try = _round_up(min(tm_c, _round_up(M, sub)), sub)
        for tf_c in (512, 256, 128):
            tf_try = _round_up(min(tf_c, lane_F), 128)
            if streaming_need(tm_try, tf_try) <= vmem_budget:
                tm, tf = tm_try, tf_try
                break
        if tm is not None:
            break
    if tm is None:
        tm, tf = sub, 128   # minimal tiles; correctness preserved

    M_pad = _round_up(M, tm)
    F_pad = _round_up(d_ff, tf)
    if M_pad != M:
        x2d = jnp.pad(x2d, ((0, M_pad - M), (0, 0)))
    if F_pad != d_ff:
        w1c = jnp.pad(w1c, ((0, F_pad - d_ff), (0, 0)))
        w2c = jnp.pad(w2c, ((0, 0), (0, F_pad - d_ff)))
        b1r = jnp.pad(b1r, ((0, 0), (0, F_pad - d_ff)))

    n_row_tiles = M_pad // tm
    cost = pl.CostEstimate(
        flops=flops,
        transcendentals=int(M),
        bytes_accessed=int(2 * M_pad * d_model * xsz
                           + n_row_tiles * (2 * d_model * F_pad * csz
                                            + F_pad * 4)
                           + 4 * d_model * 4))

    scratch = [pltpu.VMEM((tm, d_model), cdtype)]        # cached LayerNorm(x)
    if not acc_in_out:
        scratch.append(pltpu.VMEM((tm, d_model), jnp.float32))  # f32 acc

    out2d = pl.pallas_call(
        functools.partial(_ffn_streaming_kernel, eps=eps),
        out_shape=jax.ShapeDtypeStruct((M_pad, d_model), xdt),
        grid_spec=pltpu.PrefetchScalarGridSpec(
            num_scalar_prefetch=0,
            grid=(n_row_tiles, F_pad // tf),
            in_specs=[
                pl.BlockSpec((tm, d_model), lambda i, k: (i, 0)),     # x rows
                pl.BlockSpec((1, d_model), lambda i, k: (0, 0)),      # gamma
                pl.BlockSpec((1, d_model), lambda i, k: (0, 0)),      # beta
                pl.BlockSpec((tf, d_model), lambda i, k: (k, 0)),     # W1 slice
                pl.BlockSpec((1, tf), lambda i, k: (0, k)),           # b1 slice
                pl.BlockSpec((d_model, tf), lambda i, k: (0, k)),     # W2 slice
                pl.BlockSpec((1, d_model), lambda i, k: (0, 0)),      # b2
            ],
            out_specs=pl.BlockSpec((tm, d_model), lambda i, k: (i, 0)),
            scratch_shapes=scratch,
        ),
        compiler_params=pltpu.CompilerParams(
            dimension_semantics=("parallel", "arbitrary"),
            vmem_limit_bytes=int(vmem_budget),
        ),
        cost_estimate=cost,
    )(x2d, g2d, be2d, w1c, b1r, w2c, b2r)

    return out2d[:M].reshape(batch, seq, d_model)


# ----------------------------------------------------------------------------
# Pure-JAX reference.
# ----------------------------------------------------------------------------
def _reference(x, gamma, beta, w1, b1, w2, b2, eps=1e-5):
    x = x.astype(jnp.float32)
    mu = jnp.mean(x, axis=-1, keepdims=True)
    var = jnp.mean(jnp.square(x - mu), axis=-1, keepdims=True)
    xn = (x - mu) * lax.rsqrt(var + eps) * gamma + beta
    h = jnp.maximum(xn @ w1.T + b1, 0.0)
    return x + (h @ w2.T + b2)


if __name__ == "__main__":
    key = jax.random.PRNGKey(0)

    def make_params(k, batch, seq, d_model, d_ff):
        ks = jax.random.split(k, 7)
        x = jax.random.normal(ks[0], (batch, seq, d_model), dtype=jnp.float32)
        gamma = 1.0 + 0.1 * jax.random.normal(ks[1], (d_model,), dtype=jnp.float32)
        beta = 0.1 * jax.random.normal(ks[2], (d_model,), dtype=jnp.float32)
        w1 = 0.05 * jax.random.normal(ks[3], (d_ff, d_model), dtype=jnp.float32)
        b1 = 0.05 * jax.random.normal(ks[4], (d_ff,), dtype=jnp.float32)
        w2 = 0.05 * jax.random.normal(ks[5], (d_model, d_ff), dtype=jnp.float32)
        b2 = 0.05 * jax.random.normal(ks[6], (d_model,), dtype=jnp.float32)
        return x, gamma, beta, w1, b1, w2, b2

    k1, k2 = jax.random.split(key)

    # Case 1: lane-aligned shapes, default bf16 compute, weights-resident path.
    p1 = make_params(k1, 2, 8, 128, 256)
    out1 = jax.block_until_ready(decoder_ffn_sublayer(*p1))
    ref1 = _reference(*p1)
    assert out1.shape == p1[0].shape
    assert jnp.allclose(out1, ref1, atol=5e-2, rtol=5e-2), "case 1 mismatch"

    # Case 2: ragged shapes, explicit f32 compute (exact), weights-resident.
    p2 = make_params(k2, 3, 5, 96, 200)
    out2 = jax.block_until_ready(
        decoder_ffn_sublayer(*p2, compute_dtype=jnp.float32))
    ref2 = _reference(*p2)
    assert out2.shape == p2[0].shape
    assert jnp.allclose(out2, ref2, atol=1e-4, rtol=1e-4), "case 2 mismatch"

    # Case 3: ragged shapes, f32 compute, forced streaming path (d_ff tiling,
    # f32 accumulation directly into the resident output block).
    out3 = jax.block_until_ready(
        decoder_ffn_sublayer(*p2, compute_dtype=jnp.float32,
                             weights_resident=False))
    assert jnp.allclose(out3, ref2, atol=1e-4, rtol=1e-4), "case 3 mismatch"

    # Case 4: bf16 activations + bf16 compute, forced streaming path
    # (exercises the separate f32 accumulator scratch).
    x_bf = p1[0].astype(jnp.bfloat16)
    p4 = (x_bf,) + p1[1:]
    out4 = jax.block_until_ready(
        decoder_ffn_sublayer(*p4, weights_resident=False))
    ref4 = _reference(x_bf.astype(jnp.float32), *p1[1:])
    assert out4.dtype == jnp.bfloat16
    assert jnp.allclose(out4.astype(jnp.float32), ref4,
                        atol=1e-1, rtol=1e-1), "case 4 mismatch"

    print("KERNEL_OK")
</pallas_src>

<mosaic_0001>
module attributes {stable_mosaic.version = 11 : i64} {
  func.func @_ffn_resident_kernel(%arg0: i32, %arg1: memref<16x128xf32, #tpu.memory_space<vmem>>, %arg2: memref<1x128xf32, #tpu.memory_space<vmem>>, %arg3: memref<1x128xf32, #tpu.memory_space<vmem>>, %arg4: memref<256x128xbf16, #tpu.memory_space<vmem>>, %arg5: memref<1x256xf32, #tpu.memory_space<vmem>>, %arg6: memref<128x256xbf16, #tpu.memory_space<vmem>>, %arg7: memref<1x128xf32, #tpu.memory_space<vmem>>, %arg8: memref<16x128xf32, #tpu.memory_space<vmem>>) attributes {dimension_semantics = [#tpu.dimension_semantics<parallel>], iteration_bounds = array<i64: 1>, scalar_prefetch = 0 : i64, scratch_operands = 0 : i64, tpu.core_type = #tpu.core_type<tc>, window_params = [{transform_indices = @transform_0, window_bounds = array<i64: 16, 128>}, {pipeline_mode = #tpu.pipeline_mode<synchronous>, transform_indices = @transform_1, window_bounds = array<i64: 1, 128>}, {pipeline_mode = #tpu.pipeline_mode<synchronous>, transform_indices = @transform_2, window_bounds = array<i64: 1, 128>}, {pipeline_mode = #tpu.pipeline_mode<synchronous>, transform_indices = @transform_3, window_bounds = array<i64: 256, 128>}, {pipeline_mode = #tpu.pipeline_mode<synchronous>, transform_indices = @transform_4, window_bounds = array<i64: 1, 256>}, {pipeline_mode = #tpu.pipeline_mode<synchronous>, transform_indices = @transform_5, window_bounds = array<i64: 128, 256>}, {pipeline_mode = #tpu.pipeline_mode<synchronous>, transform_indices = @transform_6, window_bounds = array<i64: 1, 128>}, {transform_indices = @transform_7, window_bounds = array<i64: 16, 128>}]} {
    %c0 = arith.constant 0 : index
    %c0_0 = arith.constant 0 : index
    %0 = vector.load %arg1[%c0, %c0_0] : memref<16x128xf32, #tpu.memory_space<vmem>>, vector<16x128xf32>
    %cst = arith.constant dense<0.000000e+00> : vector<16xf32>
    %1 = vector.multi_reduction <add>, %0, %cst [1] : vector<16x128xf32> to vector<16xf32>
    %2 = vector.shape_cast %1 : vector<16xf32> to vector<16x1xf32>
    %cst_1 = arith.constant 1.280000e+02 : f32
    %3 = vector.broadcast %cst_1 : f32 to vector<16x1xf32>
    %4 = arith.divf %2, %3 : vector<16x1xf32>
    %5 = vector.broadcast %4 : vector<16x1xf32> to vector<16x128xf32>
    %6 = arith.subf %0, %5 : vector<16x128xf32>
    %7 = arith.mulf %6, %6 : vector<16x128xf32>
    %cst_2 = arith.constant dense<0.000000e+00> : vector<16xf32>
    %8 = vector.multi_reduction <add>, %7, %cst_2 [1] : vector<16x128xf32> to vector<16xf32>
    %9 = vector.shape_cast %8 : vector<16xf32> to vector<16x1xf32>
    %cst_3 = arith.constant 1.280000e+02 : f32
    %10 = vector.broadcast %cst_3 : f32 to vector<16x1xf32>
    %11 = arith.divf %9, %10 : vector<16x1xf32>
    %12 = vector.broadcast %4 : vector<16x1xf32> to vector<16x128xf32>
    %13 = arith.subf %0, %12 : vector<16x128xf32>
    %cst_4 = arith.constant 9.99999974E-6 : f32
    %14 = vector.broadcast %cst_4 : f32 to vector<16x1xf32>
    %15 = arith.addf %11, %14 : vector<16x1xf32>
    %16 = math.rsqrt %15 : vector<16x1xf32>
    %17 = vector.broadcast %16 : vector<16x1xf32> to vector<16x128xf32>
    %18 = arith.mulf %13, %17 : vector<16x128xf32>
    %c0_5 = arith.constant 0 : index
    %c0_6 = arith.constant 0 : index
    %19 = vector.load %arg2[%c0_5, %c0_6] : memref<1x128xf32, #tpu.memory_space<vmem>>, vector<1x128xf32>
    %20 = vector.broadcast %19 : vector<1x128xf32> to vector<16x128xf32>
    %21 = arith.mulf %18, %20 : vector<16x128xf32>
    %c0_7 = arith.constant 0 : index
    %c0_8 = arith.constant 0 : index
    %22 = vector.load %arg3[%c0_7, %c0_8] : memref<1x128xf32, #tpu.memory_space<vmem>>, vector<1x128xf32>
    %23 = vector.broadcast %22 : vector<1x128xf32> to vector<16x128xf32>
    %24 = arith.addf %21, %23 : vector<16x128xf32>
    %25 = arith.truncf %24 : vector<16x128xf32> to vector<16x128xbf16>
    %c0_9 = arith.constant 0 : index
    %c0_10 = arith.constant 0 : index
    %26 = vector.load %arg4[%c0_9, %c0_10] : memref<256x128xbf16, #tpu.memory_space<vmem>>, vector<256x128xbf16>
    %cst_11 = arith.constant dense<0.000000e+00> : vector<16x256xf32>
    %27 = tpu.matmul %25, %26, %cst_11 {dimension_numbers = #tpu.dot_dimension_numbers<[1], [1], [0], [0], [0, 0, 1, 0], [], []>} : vector<16x128xbf16>, vector<256x128xbf16>, vector<16x256xf32> -> vector<16x256xf32>
    %c0_12 = arith.constant 0 : index
    %c0_13 = arith.constant 0 : index
    %28 = vector.load %arg5[%c0_12, %c0_13] : memref<1x256xf32, #tpu.memory_space<vmem>>, vector<1x256xf32>
    %29 = vector.broadcast %28 : vector<1x256xf32> to vector<16x256xf32>
    %30 = arith.addf %27, %29 : vector<16x256xf32>
    %cst_14 = arith.constant 0.000000e+00 : f32
    %31 = vector.broadcast %cst_14 : f32 to vector<16x256xf32>
    %32 = arith.maximumf %30, %31 : vector<16x256xf32>
    %33 = arith.truncf %32 : vector<16x256xf32> to vector<16x256xbf16>
    %c0_15 = arith.constant 0 : index
    %c0_16 = arith.constant 0 : index
    %34 = vector.load %arg6[%c0_15, %c0_16] : memref<128x256xbf16, #tpu.memory_space<vmem>>, vector<128x256xbf16>
    %cst_17 = arith.constant dense<0.000000e+00> : vector<16x128xf32>
    %35 = tpu.matmul %33, %34, %cst_17 {dimension_numbers = #tpu.dot_dimension_numbers<[1], [1], [0], [0], [0, 0, 1, 0], [], []>} : vector<16x256xbf16>, vector<128x256xbf16>, vector<16x128xf32> -> vector<16x128xf32>
    %36 = arith.addf %0, %35 : vector<16x128xf32>
    %c0_18 = arith.constant 0 : index
    %c0_19 = arith.constant 0 : index
    %37 = vector.load %arg7[%c0_18, %c0_19] : memref<1x128xf32, #tpu.memory_space<vmem>>, vector<1x128xf32>
    %38 = vector.broadcast %37 : vector<1x128xf32> to vector<16x128xf32>
    %39 = arith.addf %36, %38 : vector<16x128xf32>
    %c0_20 = arith.constant 0 : index
    %c0_21 = arith.constant 0 : index
    %40 = vector.load %arg8[%c0_20, %c0_21] : memref<16x128xf32, #tpu.memory_space<vmem>>, vector<16x128xf32>
    tpu.vector_store %arg8[%c0_20, %c0_21], %39 {strides = array<i32>} : memref<16x128xf32, #tpu.memory_space<vmem>>, vector<16x128xf32>,
    return
  }
  func.func @transform_0(%arg0: i32) -> (i32, i32) {
    %c0_i32 = arith.constant 0 : i32
    %c0_i32_0 = arith.constant 0 : i32
    return %arg0, %c0_i32 : i32, i32
  }
  func.func @transform_1(%arg0: i32) -> (i32, i32) {
    %c0_i32 = arith.constant 0 : i32
    %c0_i32_0 = arith.constant 0 : i32
    %c0_i32_1 = arith.constant 0 : i32
    return %c0_i32, %c0_i32_0 : i32, i32
  }
  func.func @transform_2(%arg0: i32) -> (i32, i32) {
    %c0_i32 = arith.constant 0 : i32
    %c0_i32_0 = arith.constant 0 : i32
    %c0_i32_1 = arith.constant 0 : i32
    return %c0_i32, %c0_i32_0 : i32, i32
  }
  func.func @transform_3(%arg0: i32) -> (i32, i32) {
    %c0_i32 = arith.constant 0 : i32
    %c0_i32_0 = arith.constant 0 : i32
    %c0_i32_1 = arith.constant 0 : i32
    return %c0_i32, %c0_i32_0 : i32, i32
  }
  func.func @transform_4(%arg0: i32) -> (i32, i32) {
    %c0_i32 = arith.constant 0 : i32
    %c0_i32_0 = arith.constant 0 : i32
    %c0_i32_1 = arith.constant 0 : i32
    return %c0_i32, %c0_i32_0 : i32, i32
  }
  func.func @transform_5(%arg0: i32) -> (i32, i32) {
    %c0_i32 = arith.constant 0 : i32
    %c0_i32_0 = arith.constant 0 : i32
    %c0_i32_1 = arith.constant 0 : i32
    return %c0_i32, %c0_i32_0 : i32, i32
  }
  func.func @transform_6(%arg0: i32) -> (i32, i32) {
    %c0_i32 = arith.constant 0 : i32
    %c0_i32_0 = arith.constant 0 : i32
    %c0_i32_1 = arith.constant 0 : i32
    return %c0_i32, %c0_i32_0 : i32, i32
  }
  func.func @transform_7(%arg0: i32) -> (i32, i32) {
    %c0_i32 = arith.constant 0 : i32
    %c0_i32_0 = arith.constant 0 : i32
    return %arg0, %c0_i32 : i32, i32
  }
}

</mosaic_0001>

<bundles_post_ra>
// kernel: tpu_custom_call.1
= control target key start
LH: loop header
LB: loop body
LE: loop exit
PB: predicated region body
PF: predicated region fallthrough
CT: control target
= control target key end

     0   :  { %12 = vsyncpa [#allocation3], 0  ;;  %s789_s0 = inlined_call_operand.hbm [shape: f32[16,128], index: 0, kind: input, shape index: {}]   ;;  %s790_s1 = inlined_call_operand.vmem [shape: f32[1,128], index: 1, kind: input, shape index: {}]   ;;  %s791_s2 = inlined_call_operand.hbm [shape: f32[1,128], index: 2, kind: input, shape index: {}]   ;;  %s792_s3 = inlined_call_operand.hbm [shape: bf16[256,128], index: 3, kind: input, shape index: {}]   ;;  %s793_s4 = inlined_call_operand.vmem [shape: f32[1,256], index: 4, kind: input, shape index: {}]   ;;  %s794_s5 = inlined_call_operand.hbm [shape: bf16[128,256], index: 5, kind: input, shape index: {}]   ;;  %s795_s6 = inlined_call_operand.vmem [shape: f32[1,128], index: 6, kind: input, shape index: {}]   ;;  %s796_s7 = inlined_call_operand.hbm [shape: f32[16,128], index: 7, kind: output, shape index: {}]  }
   0x1   :  { %13 = vsyncpa [#allocation6], 0 }
   0x2   :  { %14 = vsyncpa [#allocation9], 0 }
   0x3   :  { %15 = vsyncpa [#allocation4], 0  ;;  %s697_s24 = smov [#allocation5]   ;;  %s698_s26 = smov [#allocation2]  }
   0x4   :  { %s36_s25 = sshll.u32 %s697_s24, 4  ;;  %s21_s27 = sshll.u32 %s698_s26, 4  ;;  %s37_s25 = int_to_ptr.vmem [resolvable:$true] %s36_s25  ;;  %s22_s27 = int_to_ptr.vmem [resolvable:$true] %s21_s27 }
   0x5   :  { %s597_s28 = scalar_lea.vmem %s37_s25, 16  ;;  %s601_s29 = scalar_lea.vmem %s37_s25, 32 }
   0x6   :  { %p598_p0 = scmp.ne.s32.totalorder %s37_s25, %s597_s28  ;;  %p602_p1 = scmp.lt.s32.totalorder %s37_s25, %s37_s25 }
   0x7   :  { %p603_p2 = scmp.lt.s32.totalorder %s601_s29, %s597_s28 }
   0x9   :  { %p604_p3 = por %p603_p2, %p602_p1 }
   0xb   :  { %p605_p4 = pnand %p604_p3, %p598_p0 }
   0xd   :  { %608 = shalt.err (!%p605_p4)
}
   0xe   :  { %39 = dma.hbm_to_vmem [thread:$0]  %s791_s2, 16, %s37_s25, [#allocation6]  }
   0xf   :  { %s617_s9 = scalar_lea.vmem %s22_s27, 256  ;;  %p622_p6 = scmp.lt.s32.totalorder %s22_s27, %s22_s27 }
  0x10   :  { %p618_p5 = scmp.ne.s32.totalorder %s22_s27, %s617_s9  ;;  %p623_p7 = scmp.lt.s32.totalorder %s617_s9, %s617_s9 }
  0x12   :  { %p624_p8 = por %p623_p7, %p622_p6 }
  0x14   :  { %p625_p9 = pnand %p624_p8, %p618_p5 }
  0x16   :  { %628 = shalt.err (!%p625_p9)
}
  0x17   :  { %s699_s10 = smov 128   ;;  %s700_s11 = smov 8  }
  0x18   :  { %27 = dma.hbm_to_vmem [thread:$0]  %s789_s0, 256, %s22_s27, [#allocation3], %s699_s10, %s699_s10, %s700_s11  }
  0x19   :  { %s701_s14 = smov [#allocation7]  }
  0x1a   :  { %s45_s15 = sshll.u32 %s701_s14, 4  ;;  %s46_s15 = int_to_ptr.vmem [resolvable:$true] %s45_s15 }
  0x1b   :  { %s637_s2 = scalar_lea.vmem %s46_s15, 2048  ;;  %p642_p11 = scmp.lt.s32.totalorder %s46_s15, %s46_s15 }
  0x1c   :  { %p638_p10 = scmp.ne.s32.totalorder %s46_s15, %s637_s2  ;;  %p643_p12 = scmp.lt.s32.totalorder %s637_s2, %s637_s2 }
  0x1e   :  { %p644_p13 = por %p643_p12, %p642_p11 }
  0x20   :  { %p645_p0 = pnand %p644_p13, %p638_p10 }
  0x22   :  { %648 = shalt.err (!%p645_p0)
}
  0x23   :  { %s702_s16 = smov 64   ;;  %s703_s17 = smov 4  }
  0x24   :  { %51 = dma.hbm_to_vmem [thread:$0]  %s792_s3, 2048, %s46_s15, [#allocation6], %s702_s16, %s702_s16, %s703_s17  }
  0x25   :  { %s704_s20 = smov [#allocation8]  }
  0x26   :  { %s59_s21 = sshll.u32 %s704_s20, 4  ;;  %s60_s21 = int_to_ptr.vmem [resolvable:$true] %s59_s21 }
  0x27   :  { %s657_s0 = scalar_lea.vmem %s60_s21, 2048  ;;  %p662_p2 = scmp.lt.s32.totalorder %s60_s21, %s60_s21 }
  0x28   :  { %p658_p1 = scmp.ne.s32.totalorder %s60_s21, %s657_s0  ;;  %p663_p3 = scmp.lt.s32.totalorder %s657_s0, %s657_s0 }
  0x2a   :  { %p664_p4 = por %p663_p3, %p662_p2 }
  0x2c   :  { %p665_p5 = pnand %p664_p4, %p658_p1 }
  0x2e   :  { %668 = shalt.err (!%p665_p5)
}
  0x2f   :  { %65 = dma.hbm_to_vmem [thread:$0]  %s794_s5, 2048, %s60_s21, [#allocation9], %s699_s10, %s699_s10, %s700_s11  }
  0x30   :  { %689 = dma.done.wait [#allocation3], 256  }
  0x31   :  { %690 = vsyncadd [#allocation3], 4294967040 }
  0x32   :  { %691 = dma.done.wait [#allocation6], 2064  }
  0x33   :  { %692 = vsyncadd [#allocation6], 4294965232 }
  0x34   :  { %693 = dma.done.wait [#allocation9], 2048  }
  0x35   :  { %694 = vsyncadd [#allocation9], 4294965248  ;;  %v764_v0 = vld [vmem:[#allocation2] sm:$0xff]  ;;  %v766_v1 = vld [vmem:[#allocation2 + $0x8] sm:$0xff]  ;;  %v159_v59 = vlaneseq  ;;  %s705_s26 = smov [#allocation10]  }
  0x36   :  { %83 = vadd.xlane.f32.xlu0 %v764_v0  ;;  %v545_v2 = vld [vmem:[#allocation7 + $0x78] sm:$0xff]   ;;  %v547_v4 = vld [vmem:[#allocation7 + $0x70] sm:$0xff]   ;;  %v549_v6 = vld [vmem:[#allocation7 + $0x68] sm:$0xff]   ;;  %s469_s27 = sshll.u32 %s705_s26, 4  ;;  %s470_s27 = int_to_ptr.vmem [resolvable:$true] %s469_s27 }
  0x37   :  { %v546_v3 = vld [vmem:[#allocation7 + $0x38] sm:$0xff]   ;;  %518 = vmatprep.subr.bf16.mxu0 %v545_v2  ;;  %v548_v5 = vld [vmem:[#allocation7 + $0x30] sm:$0xff]   ;;  %v550_v7 = vld [vmem:[#allocation7 + $0x28] sm:$0xff]   ;;  %v160_v60 = vshrl.u32 %v159_v59, 7  ;;  %s669_s28 = scalar_lea.vmem %s470_s27, 256  ;;  %p674_p7 = scmp.lt.s32.totalorder %s470_s27, %s470_s27 }
  0x38   :  { %519 = vmatpush3.bf16.xpose.msra.mxu0 %v546_v3  ;;  %v551_v8 = vld [vmem:[#allocation7 + $0x60] sm:$0xff]   ;;  %v553_v10 = vld [vmem:[#allocation7 + $0x58] sm:$0xff]   ;;  %v555_v20 = vld [vmem:[#allocation7 + $0x50] sm:$0xff]   ;;  %p670_p6 = scmp.ne.s32.totalorder %s470_s27, %s669_s28  ;;  %p675_p8 = scmp.lt.s32.totalorder %s669_s28, %s669_s28 }
  0x39   :  { %520 = vmatprep.subr.bf16.mxu0 %v547_v4  ;;  %v552_v9 = vld [vmem:[#allocation7 + $0x20] sm:$0xff]   ;;  %v554_v19 = vld [vmem:[#allocation7 + $0x18] sm:$0xff]   ;;  %v556_v21 = vld [vmem:[#allocation7 + $0x10] sm:$0xff]   ;;  %v165_v61 = vsub.s32 1, %v160_v60  ;;  %v161_v62 = vsub.s32 0, %v160_v60 }
  0x3a   :  { %85 = vadd.xlane.f32.xlu0 %v766_v1  ;;  %v557_v22 = vld [vmem:[#allocation7 + $0x48] sm:$0xff]   ;;  %v559_v24 = vld [vmem:[#allocation7 + $0x40] sm:$0xff]   ;;  %v561_v26 = vld [vmem:[#allocation8 + $0x74] ss:$8 sps:$4 sm:$0xff]   ;;  %p676_p9 = por %p675_p8, %p674_p7 }
  0x3b   :  { %v558_v23 = vld [vmem:[#allocation7 + $0x8] sm:$0xff]   ;;  %v560_v25 = vld [vmem:[#allocation7] sm:$0xff]   ;;  %v563_v27 = vld [vmem:[#allocation8 + $0x70] ss:$8 sps:$4 sm:$0xff]   ;;  %410 = vmatprep.subr.bf16.mxu1 %v561_v26 }
  0x3c   :  { %v564_v28 = vld [vmem:[#allocation8 + $0x64] ss:$8 sps:$4 sm:$0xff]   ;;  %411 = vmatpush1.bf16.xpose.msra.mxu1 %v563_v27  ;;  %v566_v29 = vld [vmem:[#allocation8 + $0x60] ss:$8 sps:$4 sm:$0xff]   ;;  %v567_v30 = vld [vmem:[#allocation8 + $0x54] ss:$8 sps:$4 sm:$0xff]   ;;  %p677_p10 = pnand %p676_p9, %p670_p6 }
  0x3d   :  { %412 = vmatprep.subr.bf16.mxu1 %v564_v28  ;;  %v569_v31 = vld [vmem:[#allocation8 + $0x50] ss:$8 sps:$4 sm:$0xff]   ;;  %v570_v32 = vld [vmem:[#allocation8 + $0x44] ss:$8 sps:$4 sm:$0xff]   ;;  %v572_v33 = vld [vmem:[#allocation8 + $0x40] ss:$8 sps:$4 sm:$0xff]  }
  0x3e   :  { %v573_v34 = vld [vmem:[#allocation8 + $0x34] ss:$8 sps:$4 sm:$0xff]   ;;  %v575_v35 = vld [vmem:[#allocation8 + $0x30] ss:$8 sps:$4 sm:$0xff]   ;;  %v576_v36 = vld [vmem:[#allocation8 + $0x24] ss:$8 sps:$4 sm:$0xff]  }
  0x3f   :  { %v578_v37 = vld [vmem:[#allocation8 + $0x20] ss:$8 sps:$4 sm:$0xff]   ;;  %v579_v38 = vld [vmem:[#allocation8 + $0x14] ss:$8 sps:$4 sm:$0xff]   ;;  %v581_v39 = vld [vmem:[#allocation8 + $0x10] ss:$8 sps:$4 sm:$0xff]  }
  0x40   :  { %521 = vmatpush3.bf16.xpose.msra.mxu0 %v548_v5  ;;  %v483_v48 = vld [vmem:[%s790_s1] ss:$0 sm:$0xff]  ;;  %v484_v52 = vld [vmem:[#allocation5] ss:$0 sm:$0xff]  ;;  %v584_v58 = vld [vmem:[#allocation8] ss:$8 sps:$4 sm:$0xff]  }
  0x41   :  { %522 = vmatprep.subr.bf16.mxu0 %v549_v6  ;;  %v582_v57 = vld [vmem:[#allocation8 + $0x4] ss:$8 sps:$4 sm:$0xff]  }
  0x42   :  { %v157_v63 = vld [vmem:[%s793_s4] sm:$0x3] }
  0x43   :  { %v166_v3 = vrot.slane %v157_v63, %v165_v61  ;;  %v162_v4 = vrot.slane %v157_v63, %v161_v62 }
  0x44   :  { %413 = vmatpush1.bf16.xpose.msra.mxu1 %v566_v29 }
  0x45   :  { %414 = vmatprep.subr.bf16.mxu1 %v567_v30 }
  0x48   :  { %523 = vmatpush3.bf16.xpose.msra.mxu0 %v550_v7 }
  0x49   :  { %524 = vmatprep.subr.bf16.mxu0 %v551_v8 }
  0x4c   :  { %415 = vmatpush1.bf16.xpose.msra.mxu1 %v569_v31 }
  0x4d   :  { %416 = vmatprep.subr.bf16.mxu1 %v570_v32 }
  0x50   :  { %525 = vmatpush3.bf16.xpose.msra.mxu0 %v552_v9 }
  0x51   :  { %526 = vmatprep.subr.bf16.mxu0 %v553_v10 }
  0x54   :  { %417 = vmatpush1.bf16.xpose.msra.mxu1 %v572_v33 }
  0x55   :  { %418 = vmatprep.subr.bf16.mxu1 %v573_v34 }
  0x58   :  { %527 = vmatpush3.bf16.xpose.msra.mxu0 %v554_v19  ;;  %v517_v19 = vld [vmem:[%s795_s6] ss:$0 sm:$0xff] }
  0x59   :  { %528 = vmatprep.subr.bf16.mxu0 %v555_v20 }
  0x5c   :  { %419 = vmatpush1.bf16.xpose.msra.mxu1 %v575_v35 }
  0x5d   :  { %420 = vmatprep.subr.bf16.mxu1 %v576_v36 }
  0x60   :  { %529 = vmatpush3.bf16.xpose.msra.mxu0 %v556_v21 }
  0x61   :  { %530 = vmatprep.subr.bf16.mxu0 %v557_v22 }
  0x64   :  { %421 = vmatpush1.bf16.xpose.msra.mxu1 %v578_v37 }
  0x65   :  { %422 = vmatprep.subr.bf16.mxu1 %v579_v38 }
  0x68   :  { %531 = vmatpush3.bf16.xpose.msra.mxu0 %v558_v23 }
  0x69   :  { %532 = vmatprep.subr.bf16.mxu0 %v559_v24 }
  0x6c   :  { %423 = vmatpush1.bf16.xpose.msra.mxu1 %v581_v39 }
  0x6d   :  { %424 = vmatprep.subr.bf16.mxu1 %v582_v57 }
  0x70   :  { %533 = vmatpush3.bf16.xpose.msra.mxu0 %v560_v25 }
  0x74   :  { %425 = vmatpush1.bf16.xpose.msra.mxu1 %v584_v58 }
  0xbf   :  { %v84_v11 = vpop.xlane.xlu0 %83 }
  0xc0   :  { %v88_v12 = vmul.f32 0.0078125, %v84_v11 }
  0xc2   :  { %v90_v13 = vsub.f32 %v764_v0, %v88_v12 }
  0xc3   :  { %v86_v14 = vpop.xlane.xlu0 %85 }
  0xc4   :  { %v89_v15 = vmul.f32 0.0078125, %v86_v14  ;;  %v92_v16 = vmul.f32 %v90_v13, %v90_v13 }
  0xc6   :  { %v91_v17 = vsub.f32 %v766_v1, %v89_v15  ;;  %94 = vadd.xlane.f32.xlu1 %v92_v16 }
  0xc8   :  { %v93_v18 = vmul.f32 %v91_v17, %v91_v17 }
  0xca   :  { %96 = vadd.xlane.f32.xlu1 %v93_v18 }
 0x14f   :  { %v95_v40 = vpop.xlane.xlu1 %94 }
 0x150   :  { %v98_v41 = vmul.f32 0.0078125, %v95_v40 }
 0x152   :  { %v100_v42 = vadd.f32 1e-05, %v98_v41 }
 0x153   :  { %v97_v43 = vpop.xlane.xlu1 %96 }
 0x154   :  { %585 = vrsqrt.f32 %v100_v42  ;;  %v99_v44 = vmul.f32 0.0078125, %v97_v43 }
 0x156   :  { %v101_v45 = vadd.f32 1e-05, %v99_v44 }
 0x158   :  { %587 = vrsqrt.f32 %v101_v45 }
 0x161   :  { %v586_v46 = vpop.eup %585 }
 0x162   :  { %v104_v47 = vmul.f32 %v586_v46, %v90_v13 }
 0x164   :  { %v113_v51 = vmul.f32 %v483_v48, %v104_v47 }
 0x165   :  { %v588_v49 = vpop.eup %587 }
 0x166   :  { %v105_v50 = vmul.f32 %v588_v49, %v91_v17  ;;  %v122_v54 = vadd.f32 %v484_v52, %v113_v51 }
 0x168   :  { %v114_v53 = vmul.f32 %v483_v48, %v105_v50 }
 0x16a   :  { %v123_v55 = vadd.f32 %v484_v52, %v114_v53 }
 0x16c   :  { %v124_v56 = vpack.c.bf16 %v123_v55, %v122_v54 }
 0x16e   :  { %534 = vmatprep.mubr.bf16.mxu0 %v124_v56 }
 0x16f   :  { %535 = vmatmul.mubr.bf16.vlgmr.msra.gmra.mxu0 %v124_v56 }
 0x22f   :  { %v299_v2 = vpop.f32.mrf.mxu0 }
 0x230   :  { %v300_v9 = vadd.f32 %v299_v2, %v162_v4 }
 0x231   :  { %v301_v5 = vpop.f32.mrf.mxu0 }
 0x232   :  { %v302_v7 = vadd.f32 %v301_v5, %v166_v3  ;;  %v308_v15 = vmax.f32 %v300_v9, 0.0 }
 0x233   :  { %v303_v6 = vpop.f32.mrf.mxu0 }
 0x234   :  { %v304_v8 = vadd.f32 %v303_v6, %v162_v4  ;;  %v309_v13 = vmax.f32 %v302_v7, 0.0 }
 0x235   :  { %v305_v10 = vpop.f32.mrf.mxu0 }
 0x236   :  { %v306_v11 = vadd.f32 %v305_v10, %v166_v3  ;;  %v310_v12 = vmax.f32 %v304_v8, 0.0 }
 0x238   :  { %v311_v14 = vmax.f32 %v306_v11, 0.0  ;;  %v312_v17 = vpack.c.bf16 %v310_v12, %v308_v15 }
 0x23a   :  { %v313_v16 = vpack.c.bf16 %v311_v14, %v309_v13 }
 0x23c   :  { %442 = vmatprep.mubr.bf16.mxu1 %v313_v16 }
 0x23d   :  { %443 = vmatmul.mubr.bf16.vlgmr.msra.gmra.mxu1 %v312_v17 }
 0x2fd   :  { %v444_v18 = vpop.f32.mrf.mxu1 }
 0x2fe   :  { %v451_v20 = vadd.f32 %v444_v18, %v764_v0 }
 0x2ff   :  { %v446_v21 = vpop.f32.mrf.mxu1 }
 0x300   :  { %v460_v22 = vadd.f32 %v517_v19, %v451_v20 }
 0x301   :  { %v447_v23 = vpop.f32.mrf.mxu1 }
 0x302   :  { %462 = vst [vmem:[#allocation10] sm:$0xff] %v460_v22  ;;  %v452_v24 = vadd.f32 %v447_v23, %v766_v1 }
 0x303   :  { %v449_v25 = vpop.f32.mrf.mxu1 }
 0x304   :  { %v461_v26 = vadd.f32 %v517_v19, %v452_v24 }
 0x306   :  { %463 = vst [vmem:[#allocation10 + $0x8] sm:$0xff] %v461_v26 }
 0x307   :  { %680 = shalt.err (!%p677_p10)
}
 0x308   :  { %475 = dma.vmem_to_hbm [thread:$0]  %s470_s27, 256, %s796_s7, [#allocation4], %s699_s10, %s699_s10, %s700_s11  }
 0x309   :  { %695 = dma.done.wait [#allocation4], 256  }
 0x30a   :  { %696 = vsyncadd [#allocation4], 4294967040 }
 0x30b   :  { %479 = vsyncpa [#allocation3], 1 }
 0x30c   :  { %480 = vsyncpa [#allocation6], 1 }
 0x30d   :  { %481 = vsyncpa [#allocation9], 1 }
 0x30e   :  { %482 = vsyncpa [#allocation4], 1 }

</bundles_post_ra>
